<compile_context>
chip_gen: v6e
topology: v6e:2x2x1
jax: 0.10.0
libtpu: 0.0.40
codegen_flags: <defaults>
</compile_context>

<pallas_src>
import functools

import jax
import jax.numpy as jnp
import numpy as np
from jax import lax
from jax.experimental import pallas as pl
from jax.experimental.pallas import tpu as pltpu


def _round_up(x, m):
    return ((x + m - 1) // m) * m


def _gelu_new(x):
    # HuggingFace "gelu_new": 0.5*x*(1 + tanh(sqrt(2/pi)*(x + 0.044715*x^3)))
    c = jnp.sqrt(2.0 / jnp.pi).astype(x.dtype)
    return 0.5 * x * (1.0 + jnp.tanh(c * (x + 0.044715 * (x * x * x))))


def adapter_kernel(x_ref, w1_ref, b1_ref, w2_ref, b2_ref, o_ref, *, row_chunk):
    # x_ref:  (tile_m, D)   streamed row tile of the flattened input
    # w1_ref: (D, Hp)       down_sampler weight (resident)
    # b1_ref: (1, Hp)       down_sampler bias (zero-padded to Hp)
    # w2_ref: (Hp, O)       up_sampler weight (resident)
    # b2_ref: (1, O)        up_sampler bias
    # o_ref:  (tile_m, O)
    tile_m = x_ref.shape[0]
    n_chunks = tile_m // row_chunk

    w1 = w1_ref[...]
    w2 = w2_ref[...]
    b1 = b1_ref[...].astype(jnp.float32)
    b2 = b2_ref[...].astype(jnp.float32)

    def body(c, carry):
        r = pl.multiple_of(c * row_chunk, row_chunk)
        xb = x_ref[pl.ds(r, row_chunk), :]
        if xb.dtype != w1.dtype:
            xb = xb.astype(w1.dtype)  # matched native-dtype MXU feed
        z = jnp.dot(xb, w1, preferred_element_type=jnp.float32)
        z = _gelu_new(z + b1)
        out = jnp.dot(z.astype(w2.dtype), w2, preferred_element_type=jnp.float32)
        o_ref[pl.ds(r, row_chunk), :] = (out + b2).astype(o_ref.dtype)
        return carry

    lax.fori_loop(0, n_chunks, body, 0, unroll=True)


def adapter_forward(x, w_down, b_down, w_up, b_up, *, tile_m=None, max_tile_m=512):
    """x: [B, S, D].  w_down: [D, H], b_down: [H], w_up: [H, O], b_up: [O]."""
    B, S, D = x.shape
    H = w_down.shape[1]
    O = w_up.shape[1]
    M = B * S

    x_itemsize = jnp.dtype(x.dtype).itemsize
    w_itemsize = jnp.dtype(w_down.dtype).itemsize
    sublane = {1: 32, 2: 16, 4: 8}.get(x_itemsize, 8)

    # Only the hidden dim gets padded (weights/biases only; activations untouched).
    Hp = _round_up(H, 128)

    x2d = x.reshape(M, D)                                   # metadata-only reshape
    w1 = jnp.pad(w_down, ((0, 0), (0, Hp - H)))
    w2 = jnp.pad(w_up, ((0, Hp - H), (0, 0)))
    b1 = jnp.pad(b_down, (0, Hp - H)).reshape(1, Hp)
    b2 = b_up.reshape(1, O)

    # ---- generation-aware VMEM budgeting ----
    try:
        vmem_cap = int(pltpu.get_tpu_info().vmem_capacity_bytes)
    except Exception:
        vmem_cap = 64 << 20  # conservative (v7x per-TensorCore)

    resident_bytes = 2 * ((D * Hp + Hp * O) * w_itemsize + (Hp + O) * 4)
    per_row_bytes = 2 * (D + O) * x_itemsize + 2 * (Hp + O) * 4
    budget = vmem_cap - (16 << 20) - resident_bytes
    tile_m_budget = max(sublane, budget // per_row_bytes) if budget > 0 else sublane

    # ---- row-tile selection: big tiles, but >= ~8 grid steps when M allows ----
    if tile_m is None:
        tile_m = max(256, _round_up(pl.cdiv(M, 8), sublane))
    tile_m = int(min(tile_m, max_tile_m, tile_m_budget))
    tile_m = max(_round_up(tile_m, sublane), sublane)
    tile_m = min(tile_m, _round_up(M, sublane))
    if tile_m >= 128:
        tile_m = _round_up(tile_m, 128)
        row_chunk = 128
    else:
        row_chunk = tile_m

    grid = (pl.cdiv(M, tile_m),)

    # VMEM estimate: double-buffered x/out tiles, resident weights, bounded f32 chunk.
    single_buf = hasattr(pl, "Buffered")
    wbuf = 1 if single_buf else 2
    vmem_est = (2 * tile_m * D * x_itemsize
                + 2 * tile_m * O * x_itemsize
                + wbuf * ((D * Hp + Hp * O) * w_itemsize + (Hp + O) * 4)
                + 2 * row_chunk * (Hp + O) * 4)
    vmem_limit = int(min(max(vmem_est + (8 << 20), vmem_cap - (16 << 20)), vmem_cap))

    # Cost from the TRUE shapes (not padded), no wrapper pad/slice traffic.
    cost = pl.CostEstimate(
        flops=2 * M * (D * H + H * O),
        transcendentals=M * H,
        bytes_accessed=int(M * (D + O) * x_itemsize
                           + (D * H + H * O) * w_itemsize
                           + (H + O) * jnp.dtype(b_down.dtype).itemsize),
    )

    kernel = functools.partial(adapter_kernel, row_chunk=row_chunk)
    out_shape = jax.ShapeDtypeStruct((M, O), x.dtype)

    def build_and_run(single_buffer_weights):
        def const_spec(shape):
            idx = lambda *_: (0,) * len(shape)
            if single_buffer_weights:
                # Constant index_map: double buffering buys nothing; halve footprint.
                return pl.BlockSpec(shape, idx, pipeline_mode=pl.Buffered(1))
            return pl.BlockSpec(shape, idx)

        return pl.pallas_call(
            kernel,
            out_shape=out_shape,
            grid_spec=pltpu.PrefetchScalarGridSpec(
                num_scalar_prefetch=0,
                grid=grid,
                in_specs=[
                    pl.BlockSpec((tile_m, D), lambda i: (i, 0)),   # x tile (streamed)
                    const_spec((D, Hp)),                           # w_down (resident)
                    const_spec((1, Hp)),                           # b_down
                    const_spec((Hp, O)),                           # w_up   (resident)
                    const_spec((1, O)),                            # b_up
                ],
                out_specs=pl.BlockSpec((tile_m, O), lambda i: (i, 0)),
            ),
            compiler_params=pltpu.CompilerParams(
                dimension_semantics=("parallel",),
                vmem_limit_bytes=vmem_limit),
            cost_estimate=cost,
        )(x2d, w1, b1, w2, b2)

    try:
        out2d = build_and_run(single_buf)
    except Exception:
        # Fallback if this JAX version rejects pipeline_mode=pl.Buffered(1).
        out2d = build_and_run(False)

    return out2d.reshape(B, S, O)


if __name__ == "__main__":
    # Module config: input_dim=32, out_dim=32, reduction_factor=2 -> down=16.
    B, S = 2, 8
    input_dim, out_dim, reduction_factor = 32, 32, 2
    down = input_dim // reduction_factor

    key = jax.random.PRNGKey(0)
    kx, k1, k2, k3, k4 = jax.random.split(key, 5)

    x = jax.random.normal(kx, (B, S, input_dim), dtype=jnp.float32)

    # Deterministic parameter init (uniform, roughly like nn.Linear default).
    bound1 = 1.0 / float(np.sqrt(input_dim))
    bound2 = 1.0 / float(np.sqrt(down))
    w_down = jax.random.uniform(k1, (input_dim, down), minval=-bound1, maxval=bound1,
                                dtype=jnp.float32)
    b_down = jax.random.uniform(k2, (down,), minval=-bound1, maxval=bound1,
                                dtype=jnp.float32)
    w_up = jax.random.uniform(k3, (down, out_dim), minval=-bound2, maxval=bound2,
                              dtype=jnp.float32)
    b_up = jax.random.uniform(k4, (out_dim,), minval=-bound2, maxval=bound2,
                              dtype=jnp.float32)

    out = adapter_forward(x, w_down, b_down, w_up, b_up)
    out = jax.block_until_ready(out)

    # float64 numpy reference (independent of MXU default-precision choices).
    def np_gelu_new(v):
        return 0.5 * v * (1.0 + np.tanh(np.sqrt(2.0 / np.pi) * (v + 0.044715 * v ** 3)))

    xn = np.asarray(x, dtype=np.float64).reshape(B * S, input_dim)
    zn = np_gelu_new(xn @ np.asarray(w_down, np.float64) + np.asarray(b_down, np.float64))
    refn = (zn @ np.asarray(w_up, np.float64) + np.asarray(b_up, np.float64)).reshape(
        B, S, out_dim)

    assert out.shape == (B, S, out_dim)
    err = float(np.max(np.abs(np.asarray(out, np.float64) - refn)))
    assert err < 1e-2, f"mismatch vs reference: max abs err {err}"

    print("KERNEL_OK")
</pallas_src>

<mosaic_0001>
module attributes {stable_mosaic.version = 11 : i64} {
  func.func @adapter_kernel(%arg0: i32, %arg1: memref<16x32xf32, #tpu.memory_space<vmem>>, %arg2: memref<32x128xf32, #tpu.memory_space<vmem>>, %arg3: memref<1x128xf32, #tpu.memory_space<vmem>>, %arg4: memref<128x32xf32, #tpu.memory_space<vmem>>, %arg5: memref<1x32xf32, #tpu.memory_space<vmem>>, %arg6: memref<16x32xf32, #tpu.memory_space<vmem>>) attributes {dimension_semantics = [#tpu.dimension_semantics<parallel>], iteration_bounds = array<i64: 1>, scalar_prefetch = 0 : i64, scratch_operands = 0 : i64, tpu.core_type = #tpu.core_type<tc>, window_params = [{transform_indices = @transform_0, window_bounds = array<i64: 16, 32>}, {pipeline_mode = #tpu.pipeline_mode<synchronous>, transform_indices = @transform_1, window_bounds = array<i64: 32, 128>}, {pipeline_mode = #tpu.pipeline_mode<synchronous>, transform_indices = @transform_2, window_bounds = array<i64: 1, 128>}, {pipeline_mode = #tpu.pipeline_mode<synchronous>, transform_indices = @transform_3, window_bounds = array<i64: 128, 32>}, {pipeline_mode = #tpu.pipeline_mode<synchronous>, transform_indices = @transform_4, window_bounds = array<i64: 1, 32>}, {transform_indices = @transform_5, window_bounds = array<i64: 16, 32>}]} {
    %c0 = arith.constant 0 : index
    %c0_0 = arith.constant 0 : index
    %0 = vector.load %arg2[%c0, %c0_0] : memref<32x128xf32, #tpu.memory_space<vmem>>, vector<32x128xf32>
    %c0_1 = arith.constant 0 : index
    %c0_2 = arith.constant 0 : index
    %1 = vector.load %arg4[%c0_1, %c0_2] : memref<128x32xf32, #tpu.memory_space<vmem>>, vector<128x32xf32>
    %c0_3 = arith.constant 0 : index
    %c0_4 = arith.constant 0 : index
    %2 = vector.load %arg3[%c0_3, %c0_4] : memref<1x128xf32, #tpu.memory_space<vmem>>, vector<1x128xf32>
    %c0_5 = arith.constant 0 : index
    %c0_6 = arith.constant 0 : index
    %3 = vector.load %arg5[%c0_5, %c0_6] : memref<1x32xf32, #tpu.memory_space<vmem>>, vector<1x32xf32>
    %c0_i32 = arith.constant 0 : i32
    %c16_i32 = arith.constant 16 : i32
    %4 = arith.muli %c0_i32, %c16_i32 : i32
    %5 = tpu.assume_multiple %4, 16 : i32
    %6 = arith.index_cast %5 : i32 to index
    %c0_7 = arith.constant 0 : index
    %7 = vector.load %arg1[%6, %c0_7] : memref<16x32xf32, #tpu.memory_space<vmem>>, vector<16x32xf32>
    %cst = arith.constant dense<0.000000e+00> : vector<16x128xf32>
    %8 = tpu.matmul %7, %0, %cst {dimension_numbers = #tpu.dot_dimension_numbers<[1], [0], [0], [1], [0, 0, 1, 1], [], []>} : vector<16x32xf32>, vector<32x128xf32>, vector<16x128xf32> -> vector<16x128xf32>
    %9 = vector.broadcast %2 : vector<1x128xf32> to vector<16x128xf32>
    %10 = arith.addf %8, %9 : vector<16x128xf32>
    %cst_8 = arith.constant 0.636619746 : f32
    %11 = math.sqrt %cst_8 : f32
    %cst_9 = arith.constant 5.000000e-01 : f32
    %12 = vector.broadcast %cst_9 : f32 to vector<16x128xf32>
    %13 = arith.mulf %12, %10 : vector<16x128xf32>
    %14 = arith.mulf %10, %10 : vector<16x128xf32>
    %15 = arith.mulf %14, %10 : vector<16x128xf32>
    %cst_10 = arith.constant 4.471500e-02 : f32
    %16 = vector.broadcast %cst_10 : f32 to vector<16x128xf32>
    %17 = arith.mulf %16, %15 : vector<16x128xf32>
    %18 = arith.addf %10, %17 : vector<16x128xf32>
    %19 = vector.broadcast %11 : f32 to vector<16x128xf32>
    %20 = arith.mulf %19, %18 : vector<16x128xf32>
    %21 = math.tanh %20 : vector<16x128xf32>
    %cst_11 = arith.constant 1.000000e+00 : f32
    %22 = vector.broadcast %cst_11 : f32 to vector<16x128xf32>
    %23 = arith.addf %22, %21 : vector<16x128xf32>
    %24 = arith.mulf %13, %23 : vector<16x128xf32>
    %cst_12 = arith.constant dense<0.000000e+00> : vector<16x32xf32>
    %25 = tpu.matmul %24, %1, %cst_12 {dimension_numbers = #tpu.dot_dimension_numbers<[1], [0], [0], [1], [0, 0, 1, 1], [], []>} : vector<16x128xf32>, vector<128x32xf32>, vector<16x32xf32> -> vector<16x32xf32>
    %26 = vector.broadcast %3 : vector<1x32xf32> to vector<16x32xf32>
    %27 = arith.addf %25, %26 : vector<16x32xf32>
    %28 = arith.index_cast %5 : i32 to index
    %c0_13 = arith.constant 0 : index
    %29 = vector.load %arg6[%28, %c0_13] : memref<16x32xf32, #tpu.memory_space<vmem>>, vector<16x32xf32>
    tpu.vector_store %arg6[%28, %c0_13], %27 {strides = array<i32>} : memref<16x32xf32, #tpu.memory_space<vmem>>, vector<16x32xf32>,
    %c1_i32 = arith.constant 1 : i32
    return
  }
  func.func @transform_0(%arg0: i32) -> (i32, i32) {
    %c0_i32 = arith.constant 0 : i32
    %c0_i32_0 = arith.constant 0 : i32
    return %arg0, %c0_i32 : i32, i32
  }
  func.func @transform_1(%arg0: i32) -> (i32, i32) {
    %c0_i32 = arith.constant 0 : i32
    %c0_i32_0 = arith.constant 0 : i32
    %c0_i32_1 = arith.constant 0 : i32
    return %c0_i32, %c0_i32_0 : i32, i32
  }
  func.func @transform_2(%arg0: i32) -> (i32, i32) {
    %c0_i32 = arith.constant 0 : i32
    %c0_i32_0 = arith.constant 0 : i32
    %c0_i32_1 = arith.constant 0 : i32
    return %c0_i32, %c0_i32_0 : i32, i32
  }
  func.func @transform_3(%arg0: i32) -> (i32, i32) {
    %c0_i32 = arith.constant 0 : i32
    %c0_i32_0 = arith.constant 0 : i32
    %c0_i32_1 = arith.constant 0 : i32
    return %c0_i32, %c0_i32_0 : i32, i32
  }
  func.func @transform_4(%arg0: i32) -> (i32, i32) {
    %c0_i32 = arith.constant 0 : i32
    %c0_i32_0 = arith.constant 0 : i32
    %c0_i32_1 = arith.constant 0 : i32
    return %c0_i32, %c0_i32_0 : i32, i32
  }
  func.func @transform_5(%arg0: i32) -> (i32, i32) {
    %c0_i32 = arith.constant 0 : i32
    %c0_i32_0 = arith.constant 0 : i32
    return %arg0, %c0_i32 : i32, i32
  }
}

module attributes {stable_mosaic.version = 11 : i64} {
  func.func @adapter_kernel(%arg0: i32, %arg1: memref<16x32xf32, #tpu.memory_space<vmem>>, %arg2: memref<32x128xf32, #tpu.memory_space<vmem>>, %arg3: memref<1x128xf32, #tpu.memory_space<vmem>>, %arg4: memref<128x32xf32, #tpu.memory_space<vmem>>, %arg5: memref<1x32xf32, #tpu.memory_space<vmem>>, %arg6: memref<16x32xf32, #tpu.memory_space<vmem>>) attributes {dimension_semantics = [#tpu.dimension_semantics<parallel>], iteration_bounds = array<i64: 1>, scalar_prefetch = 0 : i64, scratch_operands = 0 : i64, tpu.core_type = #tpu.core_type<tc>, window_params = [{transform_indices = @transform_0, window_bounds = array<i64: 16, 32>}, {pipeline_mode = #tpu.pipeline_mode<synchronous>, transform_indices = @transform_1, window_bounds = array<i64: 32, 128>}, {pipeline_mode = #tpu.pipeline_mode<synchronous>, transform_indices = @transform_2, window_bounds = array<i64: 1, 128>}, {pipeline_mode = #tpu.pipeline_mode<synchronous>, transform_indices = @transform_3, window_bounds = array<i64: 128, 32>}, {pipeline_mode = #tpu.pipeline_mode<synchronous>, transform_indices = @transform_4, window_bounds = array<i64: 1, 32>}, {transform_indices = @transform_5, window_bounds = array<i64: 16, 32>}]} {
    %c0 = arith.constant 0 : index
    %c0_0 = arith.constant 0 : index
    %0 = vector.load %arg2[%c0, %c0_0] : memref<32x128xf32, #tpu.memory_space<vmem>>, vector<32x128xf32>
    %c0_1 = arith.constant 0 : index
    %c0_2 = arith.constant 0 : index
    %1 = vector.load %arg4[%c0_1, %c0_2] : memref<128x32xf32, #tpu.memory_space<vmem>>, vector<128x32xf32>
    %c0_3 = arith.constant 0 : index
    %c0_4 = arith.constant 0 : index
    %2 = vector.load %arg3[%c0_3, %c0_4] : memref<1x128xf32, #tpu.memory_space<vmem>>, vector<1x128xf32>
    %c0_5 = arith.constant 0 : index
    %c0_6 = arith.constant 0 : index
    %3 = vector.load %arg5[%c0_5, %c0_6] : memref<1x32xf32, #tpu.memory_space<vmem>>, vector<1x32xf32>
    %c0_i32 = arith.constant 0 : i32
    %c16_i32 = arith.constant 16 : i32
    %4 = arith.muli %c0_i32, %c16_i32 : i32
    %5 = tpu.assume_multiple %4, 16 : i32
    %6 = arith.index_cast %5 : i32 to index
    %c0_7 = arith.constant 0 : index
    %7 = vector.load %arg1[%6, %c0_7] : memref<16x32xf32, #tpu.memory_space<vmem>>, vector<16x32xf32>
    %cst = arith.constant dense<0.000000e+00> : vector<16x128xf32>
    %8 = tpu.matmul %7, %0, %cst {dimension_numbers = #tpu.dot_dimension_numbers<[1], [0], [0], [1], [0, 0, 1, 1], [], []>} : vector<16x32xf32>, vector<32x128xf32>, vector<16x128xf32> -> vector<16x128xf32>
    %9 = vector.broadcast %2 : vector<1x128xf32> to vector<16x128xf32>
    %10 = arith.addf %8, %9 : vector<16x128xf32>
    %cst_8 = arith.constant 0.636619746 : f32
    %11 = math.sqrt %cst_8 : f32
    %cst_9 = arith.constant 5.000000e-01 : f32
    %12 = vector.broadcast %cst_9 : f32 to vector<16x128xf32>
    %13 = arith.mulf %12, %10 : vector<16x128xf32>
    %14 = arith.mulf %10, %10 : vector<16x128xf32>
    %15 = arith.mulf %14, %10 : vector<16x128xf32>
    %cst_10 = arith.constant 4.471500e-02 : f32
    %16 = vector.broadcast %cst_10 : f32 to vector<16x128xf32>
    %17 = arith.mulf %16, %15 : vector<16x128xf32>
    %18 = arith.addf %10, %17 : vector<16x128xf32>
    %19 = vector.broadcast %11 : f32 to vector<16x128xf32>
    %20 = arith.mulf %19, %18 : vector<16x128xf32>
    %21 = math.tanh %20 : vector<16x128xf32>
    %cst_11 = arith.constant 1.000000e+00 : f32
    %22 = vector.broadcast %cst_11 : f32 to vector<16x128xf32>
    %23 = arith.addf %22, %21 : vector<16x128xf32>
    %24 = arith.mulf %13, %23 : vector<16x128xf32>
    %cst_12 = arith.constant dense<0.000000e+00> : vector<16x32xf32>
    %25 = tpu.matmul %24, %1, %cst_12 {dimension_numbers = #tpu.dot_dimension_numbers<[1], [0], [0], [1], [0, 0, 1, 1], [], []>} : vector<16x128xf32>, vector<128x32xf32>, vector<16x32xf32> -> vector<16x32xf32>
    %26 = vector.broadcast %3 : vector<1x32xf32> to vector<16x32xf32>
    %27 = arith.addf %25, %26 : vector<16x32xf32>
    %28 = arith.index_cast %5 : i32 to index
    %c0_13 = arith.constant 0 : index
    %29 = vector.load %arg6[%28, %c0_13] : memref<16x32xf32, #tpu.memory_space<vmem>>, vector<16x32xf32>
    tpu.vector_store %arg6[%28, %c0_13], %27 {strides = array<i32>} : memref<16x32xf32, #tpu.memory_space<vmem>>, vector<16x32xf32>,
    %c1_i32 = arith.constant 1 : i32
    return
  }
  func.func @transform_0(%arg0: i32) -> (i32, i32) {
    %c0_i32 = arith.constant 0 : i32
    %c0_i32_0 = arith.constant 0 : i32
    return %arg0, %c0_i32 : i32, i32
  }
  func.func @transform_1(%arg0: i32) -> (i32, i32) {
    %c0_i32 = arith.constant 0 : i32
    %c0_i32_0 = arith.constant 0 : i32
    %c0_i32_1 = arith.constant 0 : i32
    return %c0_i32, %c0_i32_0 : i32, i32
  }
  func.func @transform_2(%arg0: i32) -> (i32, i32) {
    %c0_i32 = arith.constant 0 : i32
    %c0_i32_0 = arith.constant 0 : i32
    %c0_i32_1 = arith.constant 0 : i32
    return %c0_i32, %c0_i32_0 : i32, i32
  }
  func.func @transform_3(%arg0: i32) -> (i32, i32) {
    %c0_i32 = arith.constant 0 : i32
    %c0_i32_0 = arith.constant 0 : i32
    %c0_i32_1 = arith.constant 0 : i32
    return %c0_i32, %c0_i32_0 : i32, i32
  }
  func.func @transform_4(%arg0: i32) -> (i32, i32) {
    %c0_i32 = arith.constant 0 : i32
    %c0_i32_0 = arith.constant 0 : i32
    %c0_i32_1 = arith.constant 0 : i32
    return %c0_i32, %c0_i32_0 : i32, i32
  }
  func.func @transform_5(%arg0: i32) -> (i32, i32) {
    %c0_i32 = arith.constant 0 : i32
    %c0_i32_0 = arith.constant 0 : i32
    return %arg0, %c0_i32 : i32, i32
  }
}

</mosaic_0001>

<bundles_post_ra>
// kernel: tpu_custom_call.1
= control target key start
LH: loop header
LB: loop body
LE: loop exit
PB: predicated region body
PF: predicated region fallthrough
CT: control target
= control target key end

     0   :  { %vm51_vm0 = vcmask 261120   ;;  %s465_s0 = inlined_call_operand.vmem [shape: f32[16,32], index: 0, kind: input, shape index: {}]   ;;  %s466_s1 = inlined_call_operand.vmem [shape: f32[32,128], index: 1, kind: input, shape index: {}]   ;;  %s467_s2 = inlined_call_operand.vmem [shape: f32[1,128], index: 2, kind: input, shape index: {}]   ;;  %s468_s3 = inlined_call_operand.vmem [shape: f32[128,32], index: 3, kind: input, shape index: {}]   ;;  %s469_s4 = inlined_call_operand.vmem [shape: f32[1,32], index: 4, kind: input, shape index: {}]   ;;  %s470_s5 = inlined_call_operand.hbm [shape: f32[16,32], index: 5, kind: output, shape index: {}]  }
   0x1   :  { %v24_v0 = vld [vmem:[%s466_s1 + $0x18] sm:$0xff]  ;;  %v23_v1 = vld [vmem:[%s466_s1 + $0x10] sm:$0xff]  ;;  %v43_v2 = vld [vmem:[%s465_s0] sm:$0xff] }
   0x2   :  { %278 = vmatprep.subr.mxu0 %v24_v0  ;;  %v22_v3 = vld [vmem:[%s466_s1 + $0x8] sm:$0xff]  ;;  %286 = vmatprep.mubr.msk.f32.mxu0 %vm51_vm0, %v43_v2 }
   0x3   :  { %279 = vmatpush3.msra.mxu0 %v24_v0 }
   0x4   :  { %10 = vsyncpa [#allocation3], 0  ;;  %280 = vmatprep.subr.mxu0 %v23_v1  ;;  %v21_v4 = vld [vmem:[%s466_s1] sm:$0xff]  ;;  %v44_v5 = vld [vmem:[%s465_s0 + $0x8] sm:$0xff]  ;;  %s353_s10 = smov [#allocation2]  }
   0x5   :  { %281 = vmatpush3.msra.mxu0 %v23_v1  ;;  %v40_v6 = vld [vmem:[%s468_s3 + $0x78] sm:$0xff]  ;;  %v39_v7 = vld [vmem:[%s468_s3 + $0x70] sm:$0xff]  ;;  %v38_v8 = vld [vmem:[%s468_s3 + $0x68] sm:$0xff]  ;;  %s239_s11 = sshll.u32 %s353_s10, 4  ;;  %s240_s11 = int_to_ptr.vmem [resolvable:$true] %s239_s11 }
   0x6   :  { %282 = vmatprep.subr.mxu0 %v22_v3  ;;  %289 = vmatprep.subr.mxu1 %v40_v6  ;;  %v37_v9 = vld [vmem:[%s468_s3 + $0x60] sm:$0xff]  ;;  %v36_v10 = vld [vmem:[%s468_s3 + $0x58] sm:$0xff]  ;;  %v35_v11 = vld [vmem:[%s468_s3 + $0x50] sm:$0xff]  ;;  %s331_s12 = scalar_lea.vmem %s240_s11, 256  ;;  %p336_p1 = scmp.lt.s32.totalorder %s240_s11, %s240_s11 }
   0x7   :  { %283 = vmatpush3.msra.mxu0 %v22_v3  ;;  %290 = vmatpush3.msra.mxu1 %v40_v6  ;;  %v34_v12 = vld [vmem:[%s468_s3 + $0x48] sm:$0xff]  ;;  %v33_v13 = vld [vmem:[%s468_s3 + $0x40] sm:$0xff]  ;;  %v32_v14 = vld [vmem:[%s468_s3 + $0x38] sm:$0xff]  ;;  %p332_p0 = scmp.ne.s32.totalorder %s240_s11, %s331_s12  ;;  %p337_p2 = scmp.lt.s32.totalorder %s331_s12, %s331_s12 }
   0x8   :  { %284 = vmatprep.subr.mxu0 %v21_v4  ;;  %291 = vmatprep.subr.mxu1 %v39_v7  ;;  %v31_v15 = vld [vmem:[%s468_s3 + $0x30] sm:$0xff]  ;;  %v30_v16 = vld [vmem:[%s468_s3 + $0x28] sm:$0xff]  ;;  %v29_v17 = vld [vmem:[%s468_s3 + $0x20] sm:$0xff] }
   0x9   :  { %285 = vmatpush3.msra.mxu0 %v21_v4  ;;  %292 = vmatpush3.msra.mxu1 %v39_v7  ;;  %v28_v18 = vld [vmem:[%s468_s3 + $0x18] sm:$0xff]  ;;  %v27_v19 = vld [vmem:[%s468_s3 + $0x10] sm:$0xff]  ;;  %v26_v20 = vld [vmem:[%s468_s3 + $0x8] sm:$0xff]  ;;  %p338_p3 = por %p337_p2, %p336_p1 }
   0xa   :  { %287 = vmatmul.mubr.msk.f32.vlgmr.msra.gmra.mxu0 %vm51_vm0, %v44_v5  ;;  %293 = vmatprep.subr.mxu1 %v38_v8  ;;  %v25_v21 = vld [vmem:[%s468_s3] sm:$0xff] }
   0xb   :  { %294 = vmatpush3.msra.mxu1 %v38_v8  ;;  %v250_v22 = vld [vmem:[%s467_s2] ss:$0 sm:$0xff]  ;;  %p339_p4 = pnand %p338_p3, %p332_p0 }
   0xc   :  { %295 = vmatprep.subr.mxu1 %v37_v9  ;;  %v253_v45 = vld [vmem:[%s469_s4] ss:$0 sm:$0xff] }
   0xd   :  { %296 = vmatpush3.msra.mxu1 %v37_v9 }
   0xe   :  { %297 = vmatprep.subr.mxu1 %v36_v10 }
   0xf   :  { %298 = vmatpush3.msra.mxu1 %v36_v10 }
  0x10   :  { %299 = vmatprep.subr.mxu1 %v35_v11 }
  0x11   :  { %300 = vmatpush3.msra.mxu1 %v35_v11 }
  0x12   :  { %301 = vmatprep.subr.mxu1 %v34_v12 }
  0x13   :  { %302 = vmatpush3.msra.mxu1 %v34_v12 }
  0x14   :  { %303 = vmatprep.subr.mxu1 %v33_v13 }
  0x15   :  { %304 = vmatpush3.msra.mxu1 %v33_v13 }
  0x16   :  { %305 = vmatprep.subr.mxu1 %v32_v14 }
  0x17   :  { %306 = vmatpush3.msra.mxu1 %v32_v14 }
  0x18   :  { %307 = vmatprep.subr.mxu1 %v31_v15 }
  0x19   :  { %308 = vmatpush3.msra.mxu1 %v31_v15 }
  0x1a   :  { %309 = vmatprep.subr.mxu1 %v30_v16 }
  0x1b   :  { %310 = vmatpush3.msra.mxu1 %v30_v16 }
  0x1c   :  { %311 = vmatprep.subr.mxu1 %v29_v17 }
  0x1d   :  { %312 = vmatpush3.msra.mxu1 %v29_v17 }
  0x1e   :  { %313 = vmatprep.subr.mxu1 %v28_v18 }
  0x1f   :  { %314 = vmatpush3.msra.mxu1 %v28_v18 }
  0x20   :  { %315 = vmatprep.subr.mxu1 %v27_v19 }
  0x21   :  { %316 = vmatpush3.msra.mxu1 %v27_v19 }
  0x22   :  { %317 = vmatprep.subr.mxu1 %v26_v20 }
  0x23   :  { %318 = vmatpush3.msra.mxu1 %v26_v20 }
  0x24   :  { %319 = vmatprep.subr.mxu1 %v25_v21 }
  0x25   :  { %320 = vmatpush3.msra.mxu1 %v25_v21 }
  0xca   :  { %v288_v23 = vpop.f32.mrf.mxu0 }
  0xcb   :  { %v130_v24 = vadd.f32 %v288_v23, %v250_v22 }
  0xcc   :  { %v124_v25 = vpop.f32.mrf.mxu0 }
  0xcd   :  { %v136_v26 = vmul.f32 %v130_v24, %v130_v24  ;;  %v125_v27 = vadd.f32 %v250_v22, %v124_v25  ;;  %v134_v42 = vmul.f32 0.5, %v130_v24 }
  0xcf   :  { %v138_v28 = vmul.f32 %v136_v26, %v130_v24  ;;  %v135_v29 = vmul.f32 %v125_v27, %v125_v27  ;;  %v133_v40 = vmul.f32 0.5, %v125_v27 }
  0xd1   :  { %v140_v30 = vmul.f32 0.044715, %v138_v28  ;;  %v137_v31 = vmul.f32 %v135_v29, %v125_v27 }
  0xd3   :  { %v142_v32 = vadd.f32 %v140_v30, %v130_v24  ;;  %v139_v33 = vmul.f32 0.044715, %v137_v31 }
  0xd5   :  { %v144_v34 = vmul.f32 0.7978845, %v142_v32  ;;  %v141_v35 = vadd.f32 %v139_v33, %v125_v27 }
  0xd7   :  { %v143_v36 = vmul.f32 0.7978845, %v141_v35  ;;  %327 = vtanh.f32 %v144_v34 }
  0xd9   :  { %329 = vtanh.f32 %v143_v36 }
  0xe4   :  { %v328_v37 = vpop.eup %327 }
  0xe5   :  { %v148_v39 = vadd.f32 1.0, %v328_v37 }
  0xe6   :  { %v330_v38 = vpop.eup %329 }
  0xe7   :  { %v147_v41 = vadd.f32 1.0, %v330_v38  ;;  %v150_v44 = vmul.f32 %v148_v39, %v134_v42 }
  0xe9   :  { %v149_v43 = vmul.f32 %v147_v41, %v133_v40 }
  0xeb   :  { %321 = vmatprep.mubr.f32.mxu1 %v149_v43 }
  0xec   :  { %322 = vmatmul.mubr.f32.vlgmr.msra.gmra.mxu1 %v150_v44 }
 0x1ac   :  { %v323_v46 = vpop.f32.mrf.mxu1 }
 0x1ad   :  { %v229_v47 = vadd.f32 %v323_v46, %v253_v45 }
 0x1ae   :  { %v223_v48 = vpop.f32.mrf.mxu1 }
 0x1af   :  { %233 = vst.msk [vmem:[#allocation2 + $0x8] sm:$0xff] %vm51_vm0, %v229_v47  ;;  %v224_v49 = vadd.f32 %v253_v45, %v223_v48 }
 0x1b1   :  { %232 = vst.msk [vmem:[#allocation2] sm:$0xff] %vm51_vm0, %v224_v49 }
 0x1b2   :  { %342 = shalt.err (!%p339_p4)
}
 0x1b3   :  { %s354_s13 = smov 128   ;;  %s355_s4 = smov 8  }
 0x1b4   :  { %245 = dma.vmem_to_hbm [thread:$0]  %s240_s11, 256, %s470_s5, [#allocation3], %s354_s13, %s354_s13, %s355_s4  }
 0x1b5   :  { %351 = dma.done.wait [#allocation3], 256  }
 0x1b6   :  { %352 = vsyncadd [#allocation3], 4294967040 }
 0x1b7   :  { %249 = vsyncpa [#allocation3], 1 }

// kernel: tpu_custom_call.1
= control target key start
LH: loop header
LB: loop body
LE: loop exit
PB: predicated region body
PF: predicated region fallthrough
CT: control target
= control target key end

     0   :  { %vm51_vm0 = vcmask 261120   ;;  %s465_s0 = inlined_call_operand.vmem [shape: f32[16,32], index: 0, kind: input, shape index: {}]   ;;  %s466_s1 = inlined_call_operand.vmem [shape: f32[32,128], index: 1, kind: input, shape index: {}]   ;;  %s467_s2 = inlined_call_operand.vmem [shape: f32[1,128], index: 2, kind: input, shape index: {}]   ;;  %s468_s3 = inlined_call_operand.vmem [shape: f32[128,32], index: 3, kind: input, shape index: {}]   ;;  %s469_s4 = inlined_call_operand.vmem [shape: f32[1,32], index: 4, kind: input, shape index: {}]   ;;  %s470_s5 = inlined_call_operand.hbm [shape: f32[16,32], index: 5, kind: output, shape index: {}]  }
   0x1   :  { %v24_v0 = vld [vmem:[%s466_s1 + $0x18] sm:$0xff]  ;;  %v23_v1 = vld [vmem:[%s466_s1 + $0x10] sm:$0xff]  ;;  %v43_v2 = vld [vmem:[%s465_s0] sm:$0xff] }
   0x2   :  { %278 = vmatprep.subr.mxu0 %v24_v0  ;;  %v22_v3 = vld [vmem:[%s466_s1 + $0x8] sm:$0xff]  ;;  %286 = vmatprep.mubr.msk.f32.mxu0 %vm51_vm0, %v43_v2 }
   0x3   :  { %279 = vmatpush3.msra.mxu0 %v24_v0 }
   0x4   :  { %10 = vsyncpa [#allocation3], 0  ;;  %280 = vmatprep.subr.mxu0 %v23_v1  ;;  %v21_v4 = vld [vmem:[%s466_s1] sm:$0xff]  ;;  %v44_v5 = vld [vmem:[%s465_s0 + $0x8] sm:$0xff]  ;;  %s353_s10 = smov [#allocation2]  }
   0x5   :  { %281 = vmatpush3.msra.mxu0 %v23_v1  ;;  %v40_v6 = vld [vmem:[%s468_s3 + $0x78] sm:$0xff]  ;;  %v39_v7 = vld [vmem:[%s468_s3 + $0x70] sm:$0xff]  ;;  %v38_v8 = vld [vmem:[%s468_s3 + $0x68] sm:$0xff]  ;;  %s239_s11 = sshll.u32 %s353_s10, 4  ;;  %s240_s11 = int_to_ptr.vmem [resolvable:$true] %s239_s11 }
   0x6   :  { %282 = vmatprep.subr.mxu0 %v22_v3  ;;  %289 = vmatprep.subr.mxu1 %v40_v6  ;;  %v37_v9 = vld [vmem:[%s468_s3 + $0x60] sm:$0xff]  ;;  %v36_v10 = vld [vmem:[%s468_s3 + $0x58] sm:$0xff]  ;;  %v35_v11 = vld [vmem:[%s468_s3 + $0x50] sm:$0xff]  ;;  %s331_s12 = scalar_lea.vmem %s240_s11, 256  ;;  %p336_p1 = scmp.lt.s32.totalorder %s240_s11, %s240_s11 }
   0x7   :  { %283 = vmatpush3.msra.mxu0 %v22_v3  ;;  %290 = vmatpush3.msra.mxu1 %v40_v6  ;;  %v34_v12 = vld [vmem:[%s468_s3 + $0x48] sm:$0xff]  ;;  %v33_v13 = vld [vmem:[%s468_s3 + $0x40] sm:$0xff]  ;;  %v32_v14 = vld [vmem:[%s468_s3 + $0x38] sm:$0xff]  ;;  %p332_p0 = scmp.ne.s32.totalorder %s240_s11, %s331_s12  ;;  %p337_p2 = scmp.lt.s32.totalorder %s331_s12, %s331_s12 }
   0x8   :  { %284 = vmatprep.subr.mxu0 %v21_v4  ;;  %291 = vmatprep.subr.mxu1 %v39_v7  ;;  %v31_v15 = vld [vmem:[%s468_s3 + $0x30] sm:$0xff]  ;;  %v30_v16 = vld [vmem:[%s468_s3 + $0x28] sm:$0xff]  ;;  %v29_v17 = vld [vmem:[%s468_s3 + $0x20] sm:$0xff] }
   0x9   :  { %285 = vmatpush3.msra.mxu0 %v21_v4  ;;  %292 = vmatpush3.msra.mxu1 %v39_v7  ;;  %v28_v18 = vld [vmem:[%s468_s3 + $0x18] sm:$0xff]  ;;  %v27_v19 = vld [vmem:[%s468_s3 + $0x10] sm:$0xff]  ;;  %v26_v20 = vld [vmem:[%s468_s3 + $0x8] sm:$0xff]  ;;  %p338_p3 = por %p337_p2, %p336_p1 }
   0xa   :  { %287 = vmatmul.mubr.msk.f32.vlgmr.msra.gmra.mxu0 %vm51_vm0, %v44_v5  ;;  %293 = vmatprep.subr.mxu1 %v38_v8  ;;  %v25_v21 = vld [vmem:[%s468_s3] sm:$0xff] }
   0xb   :  { %294 = vmatpush3.msra.mxu1 %v38_v8  ;;  %v250_v22 = vld [vmem:[%s467_s2] ss:$0 sm:$0xff]  ;;  %p339_p4 = pnand %p338_p3, %p332_p0 }
   0xc   :  { %295 = vmatprep.subr.mxu1 %v37_v9  ;;  %v253_v45 = vld [vmem:[%s469_s4] ss:$0 sm:$0xff] }
   0xd   :  { %296 = vmatpush3.msra.mxu1 %v37_v9 }
   0xe   :  { %297 = vmatprep.subr.mxu1 %v36_v10 }
   0xf   :  { %298 = vmatpush3.msra.mxu1 %v36_v10 }
  0x10   :  { %299 = vmatprep.subr.mxu1 %v35_v11 }
  0x11   :  { %300 = vmatpush3.msra.mxu1 %v35_v11 }
  0x12   :  { %301 = vmatprep.subr.mxu1 %v34_v12 }
  0x13   :  { %302 = vmatpush3.msra.mxu1 %v34_v12 }
  0x14   :  { %303 = vmatprep.subr.mxu1 %v33_v13 }
  0x15   :  { %304 = vmatpush3.msra.mxu1 %v33_v13 }
  0x16   :  { %305 = vmatprep.subr.mxu1 %v32_v14 }
  0x17   :  { %306 = vmatpush3.msra.mxu1 %v32_v14 }
  0x18   :  { %307 = vmatprep.subr.mxu1 %v31_v15 }
  0x19   :  { %308 = vmatpush3.msra.mxu1 %v31_v15 }
  0x1a   :  { %309 = vmatprep.subr.mxu1 %v30_v16 }
  0x1b   :  { %310 = vmatpush3.msra.mxu1 %v30_v16 }
  0x1c   :  { %311 = vmatprep.subr.mxu1 %v29_v17 }
  0x1d   :  { %312 = vmatpush3.msra.mxu1 %v29_v17 }
  0x1e   :  { %313 = vmatprep.subr.mxu1 %v28_v18 }
  0x1f   :  { %314 = vmatpush3.msra.mxu1 %v28_v18 }
  0x20   :  { %315 = vmatprep.subr.mxu1 %v27_v19 }
  0x21   :  { %316 = vmatpush3.msra.mxu1 %v27_v19 }
  0x22   :  { %317 = vmatprep.subr.mxu1 %v26_v20 }
  0x23   :  { %318 = vmatpush3.msra.mxu1 %v26_v20 }
  0x24   :  { %319 = vmatprep.subr.mxu1 %v25_v21 }
  0x25   :  { %320 = vmatpush3.msra.mxu1 %v25_v21 }
  0xca   :  { %v288_v23 = vpop.f32.mrf.mxu0 }
  0xcb   :  { %v130_v24 = vadd.f32 %v288_v23, %v250_v22 }
  0xcc   :  { %v124_v25 = vpop.f32.mrf.mxu0 }
  0xcd   :  { %v136_v26 = vmul.f32 %v130_v24, %v130_v24  ;;  %v125_v27 = vadd.f32 %v250_v22, %v124_v25  ;;  %v134_v42 = vmul.f32 0.5, %v130_v24 }
  0xcf   :  { %v138_v28 = vmul.f32 %v136_v26, %v130_v24  ;;  %v135_v29 = vmul.f32 %v125_v27, %v125_v27  ;;  %v133_v40 = vmul.f32 0.5, %v125_v27 }
  0xd1   :  { %v140_v30 = vmul.f32 0.044715, %v138_v28  ;;  %v137_v31 = vmul.f32 %v135_v29, %v125_v27 }
  0xd3   :  { %v142_v32 = vadd.f32 %v140_v30, %v130_v24  ;;  %v139_v33 = vmul.f32 0.044715, %v137_v31 }
  0xd5   :  { %v144_v34 = vmul.f32 0.7978845, %v142_v32  ;;  %v141_v35 = vadd.f32 %v139_v33, %v125_v27 }
  0xd7   :  { %v143_v36 = vmul.f32 0.7978845, %v141_v35  ;;  %327 = vtanh.f32 %v144_v34 }
  0xd9   :  { %329 = vtanh.f32 %v143_v36 }
  0xe4   :  { %v328_v37 = vpop.eup %327 }
  0xe5   :  { %v148_v39 = vadd.f32 1.0, %v328_v37 }
  0xe6   :  { %v330_v38 = vpop.eup %329 }
  0xe7   :  { %v147_v41 = vadd.f32 1.0, %v330_v38  ;;  %v150_v44 = vmul.f32 %v148_v39, %v134_v42 }
  0xe9   :  { %v149_v43 = vmul.f32 %v147_v41, %v133_v40 }
  0xeb   :  { %321 = vmatprep.mubr.f32.mxu1 %v149_v43 }
  0xec   :  { %322 = vmatmul.mubr.f32.vlgmr.msra.gmra.mxu1 %v150_v44 }
 0x1ac   :  { %v323_v46 = vpop.f32.mrf.mxu1 }
 0x1ad   :  { %v229_v47 = vadd.f32 %v323_v46, %v253_v45 }
 0x1ae   :  { %v223_v48 = vpop.f32.mrf.mxu1 }
 0x1af   :  { %233 = vst.msk [vmem:[#allocation2 + $0x8] sm:$0xff] %vm51_vm0, %v229_v47  ;;  %v224_v49 = vadd.f32 %v253_v45, %v223_v48 }
 0x1b1   :  { %232 = vst.msk [vmem:[#allocation2] sm:$0xff] %vm51_vm0, %v224_v49 }
 0x1b2   :  { %342 = shalt.err (!%p339_p4)
}
 0x1b3   :  { %s354_s13 = smov 128   ;;  %s355_s4 = smov 8  }
 0x1b4   :  { %245 = dma.vmem_to_hbm [thread:$0]  %s240_s11, 256, %s470_s5, [#allocation3], %s354_s13, %s354_s13, %s355_s4  }
 0x1b5   :  { %351 = dma.done.wait [#allocation3], 256  }
 0x1b6   :  { %352 = vsyncadd [#allocation3], 4294967040 }
 0x1b7   :  { %249 = vsyncpa [#allocation3], 1 }

</bundles_post_ra>
